<compile_context>
chip_gen: v6e
topology: v6e:2x2x1
jax: 0.10.0
libtpu: 0.0.40
codegen_flags: <defaults>
</compile_context>

<pallas_src>
import functools

import jax
import jax.numpy as jnp
from jax.experimental import pallas as pl
from jax.experimental.pallas import tpu as pltpu


# ------------------------------ helpers --------------------------------------

def _round_up(x, m):
    return ((x + m - 1) // m) * m


def _pad2d(x, rows, cols):
    r, c = x.shape
    if r == rows and c == cols:
        return x
    return jnp.pad(x, ((0, rows - r), (0, cols - c)))


def _choose_agg_tiles(n_pad):
    """Aggregation tiles: >=512 always; 1024 rows only when >=2 row blocks
    remain (keeps the 'parallel' row axis wide enough for v7x's 2 cores)."""
    tm = 1024 if (n_pad % 1024 == 0 and n_pad >= 2048) else 512
    tk = 512
    return tm, tk


def _vmem_limit_bytes():
    """Chip-aware VMEM budget: ~3/4 of physical, capped at 96 MiB.
    v5e/v6e (128 MiB) -> 96 MiB; v7x (64 MiB) -> 48 MiB; fallback 48 MiB."""
    cap = None
    try:
        cap = int(pltpu.get_tpu_info().vmem_capacity_bytes)
    except Exception:
        cap = None
    if not cap or cap <= 0:
        cap = 64 * 1024 * 1024
    return min(96 * 1024 * 1024, (3 * cap) // 4)


# ------------------ kernel 1: feature transform  XW = X @ W ------------------

def _xw_kernel(x_ref, w_ref, xw_ref):
    xw_ref[...] = jnp.dot(
        x_ref[...], w_ref[...], preferred_element_type=jnp.float32
    ).astype(xw_ref.dtype)


def feature_transform(x_bf16, w_bf16, *, tm, vmem_limit):
    """XW = X @ W, row-tiled, bf16 x bf16 with f32 accumulation, bf16 output."""
    n, f_in = x_bf16.shape
    f_out = w_bf16.shape[1]
    grid = (n // tm,)
    cost = pl.CostEstimate(
        flops=2 * n * f_in * f_out,
        transcendentals=0,
        bytes_accessed=n * f_in * 2 + (n // tm) * f_in * f_out * 2 + n * f_out * 2,
    )
    return pl.pallas_call(
        _xw_kernel,
        out_shape=jax.ShapeDtypeStruct((n, f_out), jnp.bfloat16),
        grid_spec=pltpu.PrefetchScalarGridSpec(
            num_scalar_prefetch=0,
            grid=grid,
            in_specs=[
                pl.BlockSpec((tm, f_in), lambda i: (i, 0)),     # X row tile
                pl.BlockSpec((f_in, f_out), lambda i: (0, 0)),  # full W (resident)
            ],
            out_specs=pl.BlockSpec((tm, f_out), lambda i: (i, 0)),
        ),
        compiler_params=pltpu.CompilerParams(
            dimension_semantics=("parallel",),
            vmem_limit_bytes=vmem_limit,
        ),
        cost_estimate=cost,
    )(x_bf16, w_bf16)


# ------ kernel 2: aggregation  out = relu?(d ⊙ (A @ (d ⊙ XW)) + b), K-tiled ---

def _agg_kernel(a_ref, xw_ref, dk_ref, dm_ref, b_ref, o_ref, acc_ref, *,
                apply_relu, resident_xw, tk):
    k = pl.program_id(1)

    @pl.when(k == 0)
    def _():
        acc_ref[...] = jnp.zeros_like(acc_ref)

    # Binary adjacency streamed from HBM as int8 (bandwidth), widened in VMEM
    # so the matmul hits the bf16 MXU path on every TPU generation.
    a_bf = a_ref[...].astype(jnp.float32).astype(jnp.bfloat16)

    if resident_xw:
        start = pl.multiple_of(k * tk, tk)
        xw = xw_ref[pl.ds(start, tk), :]
    else:
        xw = xw_ref[...]
    # Inner D^{-1/2} scaling (cheap VPU work, hidden under HBM streaming of A).
    xw_scaled = (xw.astype(jnp.float32) * dk_ref[...]).astype(jnp.bfloat16)

    acc_ref[...] += jnp.dot(a_bf, xw_scaled, preferred_element_type=jnp.float32)

    @pl.when(k == pl.num_programs(1) - 1)
    def _():
        out = acc_ref[...] * dm_ref[...] + b_ref[...]
        if apply_relu:
            out = jnp.maximum(out, 0.0)
        o_ref[...] = out.astype(o_ref.dtype)


def aggregate(a_i8, xw_bf16, d_inv, b, *, apply_relu, out_dtype, tm, tk,
              resident_xw, vmem_limit):
    n_pad = a_i8.shape[0]
    f_out = xw_bf16.shape[1]
    grid = (n_pad // tm, n_pad // tk)

    if resident_xw:
        xw_spec = pl.BlockSpec((n_pad, f_out), lambda i, k: (0, 0))
        xw_reads = 1
    else:
        xw_spec = pl.BlockSpec((tk, f_out), lambda i, k: (k, 0))
        xw_reads = grid[0]

    out_bytes = jnp.dtype(out_dtype).itemsize
    cost = pl.CostEstimate(
        flops=2 * n_pad * n_pad * f_out,
        transcendentals=0,
        bytes_accessed=(n_pad * n_pad * 1
                        + xw_reads * n_pad * f_out * 2
                        + n_pad * f_out * out_bytes
                        + 2 * n_pad * 4 + f_out * 4),
    )
    return pl.pallas_call(
        functools.partial(_agg_kernel, apply_relu=apply_relu,
                          resident_xw=resident_xw, tk=tk),
        out_shape=jax.ShapeDtypeStruct((n_pad, f_out), out_dtype),
        grid_spec=pltpu.PrefetchScalarGridSpec(
            num_scalar_prefetch=0,
            grid=grid,
            in_specs=[
                pl.BlockSpec((tm, tk), lambda i, k: (i, k)),     # A (int8) tile
                xw_spec,                                         # XW (bf16)
                pl.BlockSpec((tk, 1), lambda i, k: (k, 0)),      # d^{-1/2} (K)
                pl.BlockSpec((tm, 1), lambda i, k: (i, 0)),      # d^{-1/2} (rows)
                pl.BlockSpec((1, f_out), lambda i, k: (0, 0)),   # bias
            ],
            out_specs=pl.BlockSpec((tm, f_out), lambda i, k: (i, 0)),
            scratch_shapes=[pltpu.VMEM((tm, f_out), jnp.float32)],
        ),
        compiler_params=pltpu.CompilerParams(
            dimension_semantics=("parallel", "arbitrary"),
            vmem_limit_bytes=vmem_limit,
        ),
        cost_estimate=cost,
    )(a_i8, xw_bf16, d_inv, d_inv, b)


def _fits_resident_xw(n_pad, f_out, tm, tk, out_itemsize, vmem_limit):
    """Conservative VMEM estimate for the resident-XW aggregation variant."""
    need = (2 * tm * tk                     # A int8, double-buffered
            + 2 * n_pad * f_out * 2         # resident XW (assume 2 buffers)
            + tm * f_out * 4                # f32 accumulator
            + 2 * tm * f_out * out_itemsize # output, double-buffered
            + 4 * (tm + tk) * 4 + 2 * f_out * 4)
    return need <= int(0.8 * vmem_limit)


# ------------------------------ Encoder glue ---------------------------------

def init_encoder_params(key, in_feats, n_hidden, n_layers):
    """Glorot-uniform weights / zero biases mirroring the GCN layer stack."""
    dims = [in_feats] + [n_hidden] * n_layers + [n_hidden]
    glorot = jax.nn.initializers.glorot_uniform()
    params = []
    n_total = len(dims) - 1
    for li in range(n_total):
        key, wk = jax.random.split(key)
        w = glorot(wk, (dims[li], dims[li + 1]), jnp.float32)
        b = jnp.zeros((1, dims[li + 1]), jnp.float32)
        apply_relu = li != n_total - 1  # all but last layer have activation
        params.append((w, b, apply_relu))
    return params


def prepare_graph(adj):
    """One-time graph prep (hoisted out of the forward pass and shared by the
    clean and corrupt passes): binary int8 adjacency padded to a multiple of
    512, D^{-1/2} vector, tile sizes and the chip-derived VMEM budget."""
    n = adj.shape[0]
    n_pad = _round_up(max(n, 1), 512)
    adj_f = adj.astype(jnp.float32)
    deg = jnp.sum(adj_f, axis=1)
    d_inv = jnp.where(deg > 0, 1.0 / jnp.sqrt(deg), 0.0).astype(jnp.float32)

    a_i8 = jnp.zeros((n_pad, n_pad), jnp.int8).at[:n, :n].set(
        (adj_f > 0).astype(jnp.int8))
    d_pad = jnp.zeros((n_pad, 1), jnp.float32).at[:n, 0].set(d_inv)

    tm, tk = _choose_agg_tiles(n_pad)
    return dict(a=a_i8, d=d_pad, n=n, n_pad=n_pad, tm=tm, tk=tk,
                vmem_limit=_vmem_limit_bytes())


def layer0_xw(params, graph, features):
    """Layer-0 feature transform (computed once, shared by clean/corrupt)."""
    n, f_in = features.shape
    n_pad = graph["n_pad"]
    f_in_pad = _round_up(f_in, 128)
    w0 = params[0][0]
    x_pad = _pad2d(features, n_pad, f_in_pad).astype(jnp.bfloat16)
    w_pad = _pad2d(w0, f_in_pad, _round_up(w0.shape[1], 128)).astype(jnp.bfloat16)
    return feature_transform(x_pad, w_pad, tm=512, vmem_limit=graph["vmem_limit"])


def _permute_rows(xw0, n, key):
    """Corrupt pass: (P X) W == P (X W), so permute rows of the precomputed XW
    (only the first n real rows; padded rows stay zero)."""
    perm = jax.random.permutation(key, n)
    return xw0.at[:n].set(xw0[:n][perm])


def gcn_layers_from_xw0(params, graph, xw0, *, force_stream_xw=False):
    a, d = graph["a"], graph["d"]
    n, n_pad = graph["n"], graph["n_pad"]
    tm, tk = graph["tm"], graph["tk"]
    vmem_limit = graph["vmem_limit"]
    n_total = len(params)

    h = None
    xw = xw0
    for li, (w, b, apply_relu) in enumerate(params):
        if li > 0:
            w_pad = _pad2d(w, _round_up(w.shape[0], 128),
                           _round_up(w.shape[1], 128)).astype(jnp.bfloat16)
            xw = feature_transform(h, w_pad, tm=512, vmem_limit=vmem_limit)
        f_out_pad = xw.shape[1]
        b_pad = _pad2d(b, 1, f_out_pad)

        last = li == n_total - 1
        out_dtype = jnp.float32 if last else jnp.bfloat16  # bf16 hidden states
        resident = (not force_stream_xw) and _fits_resident_xw(
            n_pad, f_out_pad, tm, tk, jnp.dtype(out_dtype).itemsize, vmem_limit)

        h = aggregate(a, xw, d, b_pad, apply_relu=apply_relu,
                      out_dtype=out_dtype, tm=tm, tk=tk,
                      resident_xw=resident, vmem_limit=vmem_limit)

    f_out_final = params[-1][0].shape[1]
    return h[:n, :f_out_final]


def encoder_forward(params, graph, features, corrupt=False, key=None,
                    force_stream_xw=False):
    xw0 = layer0_xw(params, graph, features)
    if corrupt:
        xw0 = _permute_rows(xw0, graph["n"], key)
    return gcn_layers_from_xw0(params, graph, xw0,
                               force_stream_xw=force_stream_xw)


def encoder_forward_pair(params, graph, features, key):
    """DGI-style clean + corrupted pass sharing one layer-0 X @ W."""
    xw0 = layer0_xw(params, graph, features)
    pos = gcn_layers_from_xw0(params, graph, xw0)
    neg = gcn_layers_from_xw0(params, graph, _permute_rows(xw0, graph["n"], key))
    return pos, neg


# --------------------------------- main --------------------------------------

if __name__ == "__main__":
    key = jax.random.PRNGKey(0)
    k_feat, k_adj, k_param, k_perm = jax.random.split(key, 4)

    N = 640          # pads to 1024 -> exercises multi-tile row + K grids
    IN_FEATS = 32
    N_HIDDEN = 32
    N_LAYERS = 1     # -> 2 GraphConv layers total (1 hidden + output)

    # Deterministic small graph: symmetric random adjacency with self-loops.
    a = (jax.random.uniform(k_adj, (N, N)) < 0.02).astype(jnp.float32)
    a = jnp.maximum(a, a.T)
    a = jnp.maximum(a, jnp.eye(N, dtype=jnp.float32))

    features = jax.random.normal(k_feat, (N, IN_FEATS), jnp.float32)
    params = init_encoder_params(k_param, IN_FEATS, N_HIDDEN, N_LAYERS)

    # One-time graph prep, shared by both passes and all layers.
    graph = prepare_graph(a)

    # Clean + corrupted (Encoder.forward(corrupt=True)) sharing layer-0 XW.
    out, out_neg = encoder_forward_pair(params, graph, features, k_perm)
    out = jax.block_until_ready(out)
    out_neg = jax.block_until_ready(out_neg)

    # Also exercise the streamed-XW aggregation variant.
    out_stream = jax.block_until_ready(
        encoder_forward(params, graph, features, corrupt=False,
                        force_stream_xw=True))

    # Plain-JAX reference mirroring the kernel numerics (bf16-rounded operands,
    # f32 accumulation, binary A with factored D^{-1/2}).
    def rb(x):
        return x.astype(jnp.bfloat16).astype(jnp.float32)

    a_f = (a > 0).astype(jnp.float32)
    deg = a_f.sum(axis=1)
    d_inv = jnp.where(deg > 0, 1.0 / jnp.sqrt(deg), 0.0)

    def reference(feats):
        h = feats.astype(jnp.float32)
        n_total = len(params)
        for li, (w, b, apply_relu) in enumerate(params):
            xw = rb(jnp.dot(rb(h), rb(w)))
            xw = rb(d_inv[:, None] * xw)
            out_l = d_inv[:, None] * (a_f @ xw) + b
            if apply_relu:
                out_l = jnp.maximum(out_l, 0.0)
            h = out_l if li == n_total - 1 else rb(out_l)
        return h

    h_ref = reference(features)
    perm = jax.random.permutation(k_perm, N)          # same key -> same perm
    h_ref_neg = reference(features[perm])

    assert out.shape == (N, N_HIDDEN)
    assert out_neg.shape == (N, N_HIDDEN)
    assert jnp.allclose(out, h_ref, atol=2e-2, rtol=2e-2), (
        float(jnp.max(jnp.abs(out - h_ref))))
    assert jnp.allclose(out_stream, h_ref, atol=2e-2, rtol=2e-2), (
        float(jnp.max(jnp.abs(out_stream - h_ref))))
    assert jnp.allclose(out_neg, h_ref_neg, atol=2e-2, rtol=2e-2), (
        float(jnp.max(jnp.abs(out_neg - h_ref_neg))))

    print("KERNEL_OK")
</pallas_src>

<mosaic_0001>
module attributes {stable_mosaic.version = 11 : i64} {
  func.func @_xw_kernel(%arg0: i32, %arg1: memref<512x128xbf16, #tpu.memory_space<vmem>>, %arg2: memref<128x128xbf16, #tpu.memory_space<vmem>>, %arg3: memref<512x128xbf16, #tpu.memory_space<vmem>>) attributes {dimension_semantics = [#tpu.dimension_semantics<parallel>], iteration_bounds = array<i64: 2>, scalar_prefetch = 0 : i64, scratch_operands = 0 : i64, tpu.core_type = #tpu.core_type<tc>, window_params = [{transform_indices = @transform_0, window_bounds = array<i64: 512, 128>}, {pipeline_mode = #tpu.pipeline_mode<synchronous>, transform_indices = @transform_1, window_bounds = array<i64: 128, 128>}, {transform_indices = @transform_2, window_bounds = array<i64: 512, 128>}]} {
    %c0 = arith.constant 0 : index
    %c0_0 = arith.constant 0 : index
    %0 = vector.load %arg1[%c0, %c0_0] : memref<512x128xbf16, #tpu.memory_space<vmem>>, vector<512x128xbf16>
    %c0_1 = arith.constant 0 : index
    %c0_2 = arith.constant 0 : index
    %1 = vector.load %arg2[%c0_1, %c0_2] : memref<128x128xbf16, #tpu.memory_space<vmem>>, vector<128x128xbf16>
    %cst = arith.constant dense<0.000000e+00> : vector<512x128xf32>
    %2 = tpu.matmul %0, %1, %cst {dimension_numbers = #tpu.dot_dimension_numbers<[1], [0], [0], [1], [0, 0, 1, 1], [], []>} : vector<512x128xbf16>, vector<128x128xbf16>, vector<512x128xf32> -> vector<512x128xf32>
    %3 = arith.truncf %2 : vector<512x128xf32> to vector<512x128xbf16>
    %c0_3 = arith.constant 0 : index
    %c0_4 = arith.constant 0 : index
    %4 = vector.load %arg3[%c0_3, %c0_4] : memref<512x128xbf16, #tpu.memory_space<vmem>>, vector<512x128xbf16>
    tpu.vector_store %arg3[%c0_3, %c0_4], %3 {strides = array<i32>} : memref<512x128xbf16, #tpu.memory_space<vmem>>, vector<512x128xbf16>,
    return
  }
  func.func @transform_0(%arg0: i32) -> (i32, i32) {
    %c0_i32 = arith.constant 0 : i32
    %c0_i32_0 = arith.constant 0 : i32
    return %arg0, %c0_i32 : i32, i32
  }
  func.func @transform_1(%arg0: i32) -> (i32, i32) {
    %c0_i32 = arith.constant 0 : i32
    %c0_i32_0 = arith.constant 0 : i32
    %c0_i32_1 = arith.constant 0 : i32
    return %c0_i32, %c0_i32_0 : i32, i32
  }
  func.func @transform_2(%arg0: i32) -> (i32, i32) {
    %c0_i32 = arith.constant 0 : i32
    %c0_i32_0 = arith.constant 0 : i32
    return %arg0, %c0_i32 : i32, i32
  }
}

</mosaic_0001>

<bundles_post_ra>
// kernel: tpu_custom_call.1
= control target key start
LH: loop header
LB: loop body
LE: loop exit
PB: predicated region body
PF: predicated region fallthrough
CT: control target
= control target key end

     0   :  { %7 = vsyncpa [#allocation3], 0  ;;  %s2222_s0 = inlined_call_operand.hbm [shape: bf16[1024,128], index: 0, kind: input, shape index: {}]   ;;  %s2223_s1 = inlined_call_operand.hbm [shape: bf16[128,128], index: 1, kind: input, shape index: {}]   ;;  %s2224_s2 = inlined_call_operand.hbm [shape: bf16[1024,128], index: 2, kind: output, shape index: {}]  }
   0x1   :  { %9 = vsyncpa [#allocation3 + $0x1], 0 }
   0x2   :  { %10 = vsyncpa [#allocation6], 0 }
   0x3   :  { %11 = vsyncpa [#allocation4], 0 }
   0x4   :  { %13 = vsyncpa [#allocation4 + $0x1], 0  ;;  %s1966_s9 = smov 0   ;;  %s1968_s10 = smov 0  }
   0x5   :  { %s1970_s11 = smov 0   ;;  %s1972_s12 = smov 0  }
   0x6 LB: > { %s1987_s13 = sadd.s32 4294967295, %s1942_s12   ;;  %s1206_s14 = sadd.s32 4294967294, %s1942_s12   ;;  %s1942_s12 = sphi %s1972_s12, %s2246_s12   ;;  %s1938_s11 = sphi %s1970_s11, %s2245_s11   ;;  %s1934_s10 = sphi %s1968_s10, %s2244_s10   ;;  %s1930_s9 = sphi %s1966_s9, %s2243_s9  }
   0x7   : > { %p39_p0 = scmp.ne.s32.totalorder %s1934_s10, %s1930_s9  ;;  %p2225_p1 = scmp.eq.s32.totalorder %s1987_s13, 0 }
   0x8   : > { %p90_p3 = scmp.eq.s32.totalorder %s1206_s14, 1  ;;  %p1207_p5 = scmp.ge.s32.totalorder %s1942_s12, 1 }
   0x9   : > { %p1996_p4 = por %p2225_p1, %p39_p0  ;;  %p97_p7 = scmp.lt.s32.totalorder %s1942_s12, 3 }
   0xa   : > { %p2001_p6 = por %p90_p3, %p39_p0  ;;  %s1944_s18 = smov [#allocation5]  }
   0xb   : > { %s2229_s15 = scalar_select %p1996_p4, 1, 0 }
   0xc   : > { %s2230_s16 = scalar_select %p2001_p6, 1, 0 }
   0xd   : > { %p2006_p8 = pnand %p1207_p5, %p97_p7  ;;  %s109_s19 = sshll.u32 %s1944_s18, 4  ;;  %s110_s19 = int_to_ptr.vmem [resolvable:$true] %s109_s19 }
   0xe   : > { %s2020_s21 = sadd.s32 1, %s1942_s12   ;;  %s26_s22 = sadd.s32 1, %s1938_s11 }
   0xf   : > { %s2231_s17 = scalar_select %p2006_p8, 1, 0 }
  0x10   : > { %p1727_p9 = pneg %p2006_p8  ;;  %s23_s23 = ssub.s32 %s1942_s12, %s2020_s21 }
  0x11   : > { %s1831_s24 = scalar_lea.vmem %s110_s19, 1024  ;;  %p1839_p5 = scmp.lt.s32.totalorder %s110_s19, %s110_s19 }
  0x12   : > { %p2015_p11 = pnand %p1727_p9, %p2225_p1  ;;  %p1832_p13 = scmp.ne.s32.totalorder %s110_s19, %s1831_s24 }
  0x13   : > { %p1840_p7 = scmp.lt.s32.totalorder %s1831_s24, %s1831_s24 }
  0x14   : > { %p1822_p12 = pneg %p2015_p11 }
  0x15   : > { %p1841_p10 = por %p1840_p7, %p1839_p5 }
  0x16   : > { %p1834_p0 = pnand %p1832_p13, %p1822_p12 }
  0x18   : > { %p1835_p3 = pneg %p1834_p0 }
  0x1a   : > { %p1842_p2 = pnand %p1841_p10, %p1835_p3 }
  0x1c   : > { %1845 = shalt.err (!%p1842_p2)
}
  0x1d   : > { %s1945_s25 = smov 64   ;;  %s1946_s26 = smov 4  }
  0x1e   : > { %1730 = dma.hbm_to_vmem [thread:$0]  (!%p2015_p11), %s2223_s1, 1024, %s110_s19, [#allocation6], %s1945_s25, %s1945_s25, %s1946_s26  }
  0x1f   : > { %p24_p2 = scmp.eq.s32.totalorder %s23_s23, 0  ;;  %p33_p9 = scmp.ne.s32.totalorder %s1938_s11, %s1934_s10 }
  0x20   : > { %p34_p10 = scmp.eq.s32.totalorder %s1942_s12, 0  ;;  %p1740_p12 = scmp.lt.s32.totalorder %s1942_s12, 2 }
  0x21   : > { %s2040_s29 = scalar_select %p24_p2, %s1938_s11, %s26_s22  }
  0x22   : > { %p35_p13 = por %p34_p10, %p33_p9  ;;  %p2233_p0 = scmp.eq.s32.totalorder %s1987_s13, 1 }
  0x23   : > { %s123_s3 = sand.u32 1, %s1938_s11   ;;  %s1326_s4 = sshll.u32 %s1942_s12, 12 }
  0x24   : > { %p2044_p3 = por %p2233_p0, %p33_p9  ;;  %s1210_s5 = sshll.u32 %s123_s3, 8 }
  0x25   : > { %s2053_s8 = scalar_lea.hbm %s2222_s0, %s1326_s4  ;;  %s127_s14 = scalar_lea.vmem [#allocation2], %s1210_s5 }
  0x26   : > { %s2234_s30 = scalar_select %p2044_p3, 1, 0 }
  0x27   : > { %s134_s18 = sshll.u32 %s127_s14, 4  ;;  %p2055_p11 = pnand %p1740_p12, %p35_p13  ;;  %s2059_s18 = int_to_ptr.vmem [resolvable:$true] %s134_s18 }
  0x28   : > { %s2061_s20 = scalar_lea.sflag [#allocation3], %s123_s3  ;;  %s1846_s22 = scalar_lea.hbm %s2053_s8, 4096 }
  0x29   : > { %p1847_p5 = scmp.ne.s32.totalorder %s2053_s8, %s1846_s22  ;;  %p1848_p7 = pneg %p2055_p11 }
  0x2a   : > { %s1851_s27 = scalar_lea.hbm %s2222_s0, 8192  ;;  %p1852_p10 = scmp.lt.s32.totalorder %s2053_s8, %s2222_s0 }
  0x2b   : > { %p1849_p2 = pnand %p1848_p7, %p1847_p5  ;;  %p1853_p12 = scmp.lt.s32.totalorder %s1851_s27, %s1846_s22 }
  0x2d   : > { %p1850_p9 = pneg %p1849_p2  ;;  %p1854_p13 = por %p1853_p12, %p1852_p10 }
  0x2f   : > { %p1855_p0 = pnand %p1854_p13, %p1850_p9 }
  0x31   : > { %1858 = shalt.err (!%p1855_p0)
}
  0x32   : > { %s1859_s3 = scalar_lea.vmem %s2059_s18, 4096  ;;  %s1947_s5 = smov [#allocation2]  }
  0x33   : > { %p1860_p1 = scmp.ne.s32.totalorder %s2059_s18, %s1859_s3  ;;  %s1864_s6 = sshll.u32 %s1947_s5, 4  ;;  %s1865_s6 = int_to_ptr.vmem [resolvable:$false] %s1864_s6 }
  0x34   : > { %s1866_s7 = scalar_lea.vmem %s1865_s6, 8192  ;;  %p1867_p2 = scmp.lt.s32.totalorder %s2059_s18, %s1865_s6 }
  0x35   : > { %p1862_p6 = pnand %p1860_p1, %p1848_p7  ;;  %p1868_p3 = scmp.lt.s32.totalorder %s1866_s7, %s1859_s3 }
  0x37   : > { %p1863_p5 = pneg %p1862_p6  ;;  %p1869_p4 = por %p1868_p3, %p1867_p2 }
  0x39   : > { %p1870_p8 = pnand %p1869_p4, %p1863_p5 }
  0x3b   : > { %1873 = shalt.err (!%p1870_p8)
}
  0x3c   : > { %1734 = dma.hbm_to_vmem [thread:$0]  (!%p2055_p11), %s2053_s8, 4096, %s2059_s18, %s2061_s20, %s1945_s25, %s1945_s25, %s1946_s26  }
  0x3d   : > { %p2236_p1 = scmp.ne.s32.totalorder %s2231_s17, 0 }
  0x3e   : > { %s2088_s14 = sand.u32 (!%p2236_p1), 1, %s1934_s10   ;;  %p2237_p4 = scmp.ne.s32.totalorder (!%p2236_p1), %s2229_s15, 0 }
  0x3f   : > { %146 = sbr.rel (%p2236_p1) target bundleno = 376 (0x178), region = 28  ;;  %s1214_s22 = sshll.u32 (!%p2236_p1), %s2088_s14, 8 }
  0x40   : > { %s149_s23 = scalar_lea.sflag (!%p2236_p1), [#allocation3], %s2088_s14  ;;  %s2094_s19 = scalar_lea.vmem (!%p2236_p1), [#allocation2], %s1214_s22 }
  0x44   : > { %1917 = dma.done.wait (%p2237_p4), %s149_s23, 4096  }
  0x45   : > { %1919 = vsyncadd (%p2237_p4), %s149_s23, 4294963200  ;;  %p2238_p6 = scmp.eq.s32.totalorder %s1987_s13, 0 }
  0x47   : > { %1921 = dma.done.wait (%p2238_p6), [#allocation6], 1024   ;;  %p2239_p8 = pmov %p2238_p6 }
  0x48   : > { %v1780_v0 = vld [vmem:[#allocation5 + $0x38] sm:$0xff]   ;;  %v1781_v1 = vld [vmem:[#allocation5 + $0x30] sm:$0xff]   ;;  %v1782_v2 = vld [vmem:[#allocation5 + $0x28] sm:$0xff]   ;;  %s2138_s15 = scalar_lea.vmem [#allocation7], %s1214_s22  ;;  %s1391_s17 = sshll.u32 %s1987_s13, 12 }
  0x49   : > { %1923 = vsyncadd (%p2239_p8), [#allocation6], 4294966272  ;;  %1623 = vmatprep.subr.bf16.mxu0 %v1780_v0  ;;  %1703 = vmatprep.subr.bf16.mxu1 %v1780_v0  ;;  %v1783_v3 = vld [vmem:[#allocation5 + $0x20] sm:$0xff]   ;;  %v1784_v6 = vld [vmem:[#allocation5 + $0x18] sm:$0xff]   ;;  %s1123_s25 = sshll.u32 %s2138_s15, 4  ;;  %s2173_s18 = scalar_lea.hbm %s2224_s2, %s1391_s17  ;;  %s2175_s25 = int_to_ptr.vmem [resolvable:$true] %s1123_s25 }
  0x4a   : > { %1624 = vmatpush3.bf16.msra.mxu0 %v1780_v0  ;;  %1711 = vmatpush3.bf16.msra.mxu1 %v1780_v0  ;;  %v1788_v4 = vld [vmem:[%s2094_s19] sm:$0xff]   ;;  %v1785_v7 = vld [vmem:[#allocation5 + $0x10] sm:$0xff]   ;;  %v1786_v8 = vld [vmem:[#allocation5 + $0x8] sm:$0xff]   ;;  %s1110_s13 = scalar_lea.sflag [#allocation4], %s2088_s14  ;;  %s1874_s20 = scalar_lea.vmem %s2175_s25, 4096 }
  0x4b   : > { %1625 = vmatprep.subr.bf16.mxu0 %v1781_v1  ;;  %1704 = vmatprep.subr.bf16.mxu1 %v1781_v1  ;;  %v1789_v5 = vld [vmem:[%s2094_s19 + $0x80] sm:$0xff]   ;;  %v1790_v10 = vld [vmem:[%s2094_s19 + $0x8] sm:$0xff]   ;;  %v1792_v12 = vld [vmem:[%s2094_s19 + $0x10] sm:$0xff]   ;;  %p1875_p3 = scmp.ne.s32.totalorder %s2175_s25, %s1874_s20  ;;  %p2240_p11 = scmp.ne.s32.totalorder %s2234_s30, 0 }
  0x4c   : > { %1639 = vmatprep.mubr.bf16.mxu0 %v1788_v4  ;;  %1671 = vmatprep.mubr.bf16.mxu1 %v1789_v5  ;;  %v1787_v9 = vld [vmem:[#allocation5] sm:$0xff]   ;;  %v1791_v11 = vld [vmem:[%s2094_s19 + $0x88] sm:$0xff]   ;;  %v1793_v13 = vld [vmem:[%s2094_s19 + $0x90] sm:$0xff]   ;;  %s1948_s24 = smov [#allocation7]  }
  0x4d   : > { %v1794_v14 = vld [vmem:[%s2094_s19 + $0x18] sm:$0xff]   ;;  %v1796_v16 = vld [vmem:[%s2094_s19 + $0x20] sm:$0xff]   ;;  %v1798_v18 = vld [vmem:[%s2094_s19 + $0x28] sm:$0xff]   ;;  %p1876_p7 = pnand %p1875_p3, %p2240_p11  ;;  %s1878_s27 = sshll.u32 %s1948_s24, 4  ;;  %s1879_s27 = int_to_ptr.vmem [resolvable:$false] %s1878_s27 }
  0x4e   : > { %1626 = vmatpush3.bf16.msra.mxu0 %v1781_v1  ;;  %1712 = vmatpush3.bf16.msra.mxu1 %v1781_v1  ;;  %v1795_v15 = vld [vmem:[%s2094_s19 + $0x98] sm:$0xff]   ;;  %v1797_v17 = vld [vmem:[%s2094_s19 + $0xa0] sm:$0xff]   ;;  %v1799_v19 = vld [vmem:[%s2094_s19 + $0xa8] sm:$0xff]   ;;  %s1880_s28 = scalar_lea.vmem %s1879_s27, 8192  ;;  %p1881_p10 = scmp.lt.s32.totalorder %s2175_s25, %s1879_s27 }
  0x4f   : > { %1627 = vmatprep.subr.bf16.mxu0 %v1782_v2  ;;  %1705 = vmatprep.subr.bf16.mxu1 %v1782_v2  ;;  %v1800_v20 = vld [vmem:[%s2094_s19 + $0x30] sm:$0xff]   ;;  %v1802_v22 = vld [vmem:[%s2094_s19 + $0x38] sm:$0xff]   ;;  %v1804_v24 = vld [vmem:[%s2094_s19 + $0x40] sm:$0xff]   ;;  %p1877_p9 = pneg %p1876_p7  ;;  %p1882_p12 = scmp.lt.s32.totalorder %s1880_s28, %s1874_s20 }
  0x50   : > { %v1801_v21 = vld [vmem:[%s2094_s19 + $0xb0] sm:$0xff]   ;;  %v1803_v23 = vld [vmem:[%s2094_s19 + $0xb8] sm:$0xff]   ;;  %v1805_v25 = vld [vmem:[%s2094_s19 + $0xc0] sm:$0xff]  }
  0x51   : > { %v1806_v26 = vld [vmem:[%s2094_s19 + $0x48] sm:$0xff]   ;;  %v1808_v28 = vld [vmem:[%s2094_s19 + $0x50] sm:$0xff]   ;;  %v1810_v30 = vld [vmem:[%s2094_s19 + $0x58] sm:$0xff]   ;;  %p1883_p13 = por %p1882_p12, %p1881_p10 }
  0x52   : > { %1628 = vmatpush3.bf16.msra.mxu0 %v1782_v2  ;;  %1713 = vmatpush3.bf16.msra.mxu1 %v1782_v2  ;;  %v1807_v27 = vld [vmem:[%s2094_s19 + $0xc8] sm:$0xff]   ;;  %v1809_v29 = vld [vmem:[%s2094_s19 + $0xd0] sm:$0xff]   ;;  %v1811_v31 = vld [vmem:[%s2094_s19 + $0xd8] sm:$0xff]  }
  0x53   : > { %1629 = vmatprep.subr.bf16.mxu0 %v1783_v3  ;;  %1706 = vmatprep.subr.bf16.mxu1 %v1783_v3  ;;  %v1812_v32 = vld [vmem:[%s2094_s19 + $0x60] sm:$0xff]   ;;  %v1814_v34 = vld [vmem:[%s2094_s19 + $0x68] sm:$0xff]   ;;  %v1816_v36 = vld [vmem:[%s2094_s19 + $0x70] sm:$0xff]   ;;  %p1884_p0 = pnand %p1883_p13, %p1877_p9 }
  0x54   : > { %v1813_v33 = vld [vmem:[%s2094_s19 + $0xe0] sm:$0xff]   ;;  %v1815_v35 = vld [vmem:[%s2094_s19 + $0xe8] sm:$0xff]   ;;  %v1817_v37 = vld [vmem:[%s2094_s19 + $0xf0] sm:$0xff]  }
  0x55   : > { %v1818_v38 = vld [vmem:[%s2094_s19 + $0x78] sm:$0xff]  }
  0x56   : > { %1630 = vmatpush3.bf16.msra.mxu0 %v1783_v3  ;;  %1714 = vmatpush3.bf16.msra.mxu1 %v1783_v3  ;;  %v1819_v39 = vld [vmem:[%s2094_s19 + $0xf8] sm:$0xff]  }
  0x57   : > { %1631 = vmatprep.subr.bf16.mxu0 %v1784_v6  ;;  %1707 = vmatprep.subr.bf16.mxu1 %v1784_v6 }
  0x5a   : > { %1632 = vmatpush3.bf16.msra.mxu0 %v1784_v6  ;;  %1715 = vmatpush3.bf16.msra.mxu1 %v1784_v6 }
  0x5b   : > { %1633 = vmatprep.subr.bf16.mxu0 %v1785_v7  ;;  %1708 = vmatprep.subr.bf16.mxu1 %v1785_v7 }
  0x5e   : > { %1634 = vmatpush3.bf16.msra.mxu0 %v1785_v7  ;;  %1716 = vmatpush3.bf16.msra.mxu1 %v1785_v7 }
  0x5f   : > { %1635 = vmatprep.subr.bf16.mxu0 %v1786_v8  ;;  %1709 = vmatprep.subr.bf16.mxu1 %v1786_v8 }
  0x62   : > { %1636 = vmatpush3.bf16.msra.mxu0 %v1786_v8  ;;  %1717 = vmatpush3.bf16.msra.mxu1 %v1786_v8 }
  0x63   : > { %1637 = vmatprep.subr.bf16.mxu0 %v1787_v9  ;;  %1710 = vmatprep.subr.bf16.mxu1 %v1787_v9 }
  0x66   : > { %1638 = vmatpush3.bf16.msra.mxu0 %v1787_v9  ;;  %1718 = vmatpush3.bf16.msra.mxu1 %v1787_v9 }
  0x69   : > { %1640 = vmatmul.mubr.bf16.vlgmr.msra.gmra.mxu0 %v1790_v10  ;;  %1672 = vmatmul.mubr.bf16.vlgmr.msra.gmra.mxu1 %v1791_v11 }
  0x6a   : > { %1643 = vmatprep.mubr.bf16.mxu0 %v1792_v12  ;;  %1675 = vmatprep.mubr.bf16.mxu1 %v1793_v13 }
  0x71   : > { %1644 = vmatmul.mubr.bf16.gmra.mxu0 %v1794_v14  ;;  %1676 = vmatmul.mubr.bf16.gmra.mxu1 %v1795_v15 }
  0x72   : > { %1647 = vmatprep.mubr.bf16.mxu0 %v1796_v16  ;;  %1679 = vmatprep.mubr.bf16.mxu1 %v1797_v17 }
  0x79   : > { %1648 = vmatmul.mubr.bf16.gmra.mxu0 %v1798_v18  ;;  %1680 = vmatmul.mubr.bf16.gmra.mxu1 %v1799_v19 }
  0x7a   : > { %1651 = vmatprep.mubr.bf16.mxu0 %v1800_v20  ;;  %1683 = vmatprep.mubr.bf16.mxu1 %v1801_v21 }
  0x81   : > { %1652 = vmatmul.mubr.bf16.gmra.mxu0 %v1802_v22  ;;  %1684 = vmatmul.mubr.bf16.gmra.mxu1 %v1803_v23 }
  0x82   : > { %1655 = vmatprep.mubr.bf16.mxu0 %v1804_v24  ;;  %1687 = vmatprep.mubr.bf16.mxu1 %v1805_v25 }
  0x89   : > { %1656 = vmatmul.mubr.bf16.gmra.mxu0 %v1806_v26  ;;  %1688 = vmatmul.mubr.bf16.gmra.mxu1 %v1807_v27 }
  0x8a   : > { %1659 = vmatprep.mubr.bf16.mxu0 %v1808_v28  ;;  %1691 = vmatprep.mubr.bf16.mxu1 %v1809_v29 }
  0x91   : > { %1660 = vmatmul.mubr.bf16.gmra.mxu0 %v1810_v30  ;;  %1692 = vmatmul.mubr.bf16.gmra.mxu1 %v1811_v31 }
  0x92   : > { %1663 = vmatprep.mubr.bf16.mxu0 %v1812_v32  ;;  %1695 = vmatprep.mubr.bf16.mxu1 %v1813_v33 }
  0x99   : > { %1664 = vmatmul.mubr.bf16.gmra.mxu0 %v1814_v34  ;;  %1696 = vmatmul.mubr.bf16.gmra.mxu1 %v1815_v35 }
  0x9a   : > { %1667 = vmatprep.mubr.bf16.mxu0 %v1816_v36  ;;  %1699 = vmatprep.mubr.bf16.mxu1 %v1817_v37 }
  0xa1   : > { %1668 = vmatmul.mubr.bf16.gmra.mxu0 %v1818_v38  ;;  %1700 = vmatmul.mubr.bf16.gmra.mxu1 %v1819_v39 }
 0x129   : > { %v1641_v40 = vpop.f32.mrf.mxu0  ;;  %v1673_v41 = vpop.f32.mrf.mxu1 }
 0x12b   : > { %v534_v42 = vpop.f32.mrf.mxu0  ;;  %v662_v43 = vpop.f32.mrf.mxu1 }
 0x12d   : > { %v1642_v44 = vpop.f32.mrf.mxu0  ;;  %v1674_v45 = vpop.f32.mrf.mxu1 }
 0x12e   : > { %v1400_v46 = vpack.c.bf16 %v1642_v44, %v1641_v40  ;;  %v1480_v47 = vpack.c.bf16 %v1674_v45, %v1673_v41 }
 0x12f   : > { %v537_v48 = vpop.f32.mrf.mxu0  ;;  %v665_v49 = vpop.f32.mrf.mxu1 }
 0x130   : > { %1552 = vst [vmem:[%s2138_s15 + $0x8] sm:$0xff] %v1400_v46   ;;  %1568 = vst [vmem:[%s2138_s15 + $0x88] sm:$0xff] %v1480_v47   ;;  %v1395_v50 = vpack.c.bf16 %v537_v48, %v534_v42  ;;  %v1475_v51 = vpack.c.bf16 %v665_v49, %v662_v43 }
 0x131   : > { %v1645_v52 = vpop.f32.mrf.mxu0  ;;  %v1677_v53 = vpop.f32.mrf.mxu1 }
 0x132   : > { %1396 = vst [vmem:[%s2138_s15] sm:$0xff] %v1395_v50   ;;  %1567 = vst [vmem:[%s2138_s15 + $0x80] sm:$0xff] %v1475_v51  }
 0x133   : > { %v550_v54 = vpop.f32.mrf.mxu0  ;;  %v678_v55 = vpop.f32.mrf.mxu1 }
 0x135   : > { %v1646_v56 = vpop.f32.mrf.mxu0  ;;  %v1678_v57 = vpop.f32.mrf.mxu1 }
 0x136   : > { %v1410_v58 = vpack.c.bf16 %v1646_v56, %v1645_v52  ;;  %v1490_v59 = vpack.c.bf16 %v1678_v57, %v1677_v53 }
 0x137   : > { %v553_v60 = vpop.f32.mrf.mxu0  ;;  %v681_v61 = vpop.f32.mrf.mxu1 }
 0x138   : > { %1554 = vst [vmem:[%s2138_s15 + $0x18] sm:$0xff] %v1410_v58   ;;  %1570 = vst [vmem:[%s2138_s15 + $0x98] sm:$0xff] %v1490_v59   ;;  %v1405_v62 = vpack.c.bf16 %v553_v60, %v550_v54  ;;  %v1485_v63 = vpack.c.bf16 %v681_v61, %v678_v55 }
 0x139   : > { %v1649_v0 = vpop.f32.mrf.mxu0  ;;  %v1681_v1 = vpop.f32.mrf.mxu1 }
 0x13a   : > { %1553 = vst [vmem:[%s2138_s15 + $0x10] sm:$0xff] %v1405_v62   ;;  %1569 = vst [vmem:[%s2138_s15 + $0x90] sm:$0xff] %v1485_v63  }
 0x13b   : > { %v566_v2 = vpop.f32.mrf.mxu0  ;;  %v694_v3 = vpop.f32.mrf.mxu1 }
 0x13d   : > { %v1650_v4 = vpop.f32.mrf.mxu0  ;;  %v1682_v5 = vpop.f32.mrf.mxu1 }
 0x13e   : > { %v1420_v6 = vpack.c.bf16 %v1650_v4, %v1649_v0  ;;  %v1500_v7 = vpack.c.bf16 %v1682_v5, %v1681_v1 }
 0x13f   : > { %v569_v8 = vpop.f32.mrf.mxu0  ;;  %v697_v9 = vpop.f32.mrf.mxu1 }
 0x140   : > { %1556 = vst [vmem:[%s2138_s15 + $0x28] sm:$0xff] %v1420_v6   ;;  %1572 = vst [vmem:[%s2138_s15 + $0xa8] sm:$0xff] %v1500_v7   ;;  %v1415_v10 = vpack.c.bf16 %v569_v8, %v566_v2  ;;  %v1495_v11 = vpack.c.bf16 %v697_v9, %v694_v3 }
 0x141   : > { %v1653_v12 = vpop.f32.mrf.mxu0  ;;  %v1685_v13 = vpop.f32.mrf.mxu1 }
 0x142   : > { %1555 = vst [vmem:[%s2138_s15 + $0x20] sm:$0xff] %v1415_v10   ;;  %1571 = vst [vmem:[%s2138_s15 + $0xa0] sm:$0xff] %v1495_v11  }
 0x143   : > { %v582_v14 = vpop.f32.mrf.mxu0  ;;  %v710_v15 = vpop.f32.mrf.mxu1 }
 0x145   : > { %v1654_v16 = vpop.f32.mrf.mxu0  ;;  %v1686_v17 = vpop.f32.mrf.mxu1 }
 0x146   : > { %v1430_v18 = vpack.c.bf16 %v1654_v16, %v1653_v12  ;;  %v1510_v19 = vpack.c.bf16 %v1686_v17, %v1685_v13 }
 0x147   : > { %v585_v20 = vpop.f32.mrf.mxu0  ;;  %v713_v21 = vpop.f32.mrf.mxu1 }
 0x148   : > { %1558 = vst [vmem:[%s2138_s15 + $0x38] sm:$0xff] %v1430_v18   ;;  %1574 = vst [vmem:[%s2138_s15 + $0xb8] sm:$0xff] %v1510_v19   ;;  %v1425_v22 = vpack.c.bf16 %v585_v20, %v582_v14  ;;  %v1505_v23 = vpack.c.bf16 %v713_v21, %v710_v15 }
 0x149   : > { %v1657_v24 = vpop.f32.mrf.mxu0  ;;  %v1689_v25 = vpop.f32.mrf.mxu1 }
 0x14a   : > { %1557 = vst [vmem:[%s2138_s15 + $0x30] sm:$0xff] %v1425_v22   ;;  %1573 = vst [vmem:[%s2138_s15 + $0xb0] sm:$0xff] %v1505_v23  }
 0x14b   : > { %v598_v26 = vpop.f32.mrf.mxu0  ;;  %v726_v27 = vpop.f32.mrf.mxu1 }
 0x14d   : > { %v1658_v28 = vpop.f32.mrf.mxu0  ;;  %v1690_v29 = vpop.f32.mrf.mxu1 }
 0x14e   : > { %v1440_v30 = vpack.c.bf16 %v1658_v28, %v1657_v24  ;;  %v1520_v31 = vpack.c.bf16 %v1690_v29, %v1689_v25 }
 0x14f   : > { %v601_v32 = vpop.f32.mrf.mxu0  ;;  %v729_v33 = vpop.f32.mrf.mxu1 }
 0x150   : > { %1560 = vst [vmem:[%s2138_s15 + $0x48] sm:$0xff] %v1440_v30   ;;  %1576 = vst [vmem:[%s2138_s15 + $0xc8] sm:$0xff] %v1520_v31   ;;  %v1435_v34 = vpack.c.bf16 %v601_v32, %v598_v26  ;;  %v1515_v35 = vpack.c.bf16 %v729_v33, %v726_v27 }
 0x151   : > { %v1661_v36 = vpop.f32.mrf.mxu0  ;;  %v1693_v37 = vpop.f32.mrf.mxu1 }
 0x152   : > { %1559 = vst [vmem:[%s2138_s15 + $0x40] sm:$0xff] %v1435_v34   ;;  %1575 = vst [vmem:[%s2138_s15 + $0xc0] sm:$0xff] %v1515_v35  }
 0x153   : > { %v614_v38 = vpop.f32.mrf.mxu0  ;;  %v742_v39 = vpop.f32.mrf.mxu1 }
 0x155   : > { %v1662_v40 = vpop.f32.mrf.mxu0  ;;  %v1694_v41 = vpop.f32.mrf.mxu1 }
 0x156   : > { %v1450_v42 = vpack.c.bf16 %v1662_v40, %v1661_v36  ;;  %v1530_v43 = vpack.c.bf16 %v1694_v41, %v1693_v37 }
 0x157   : > { %v617_v44 = vpop.f32.mrf.mxu0  ;;  %v745_v45 = vpop.f32.mrf.mxu1 }
 0x158   : > { %1562 = vst [vmem:[%s2138_s15 + $0x58] sm:$0xff] %v1450_v42   ;;  %1578 = vst [vmem:[%s2138_s15 + $0xd8] sm:$0xff] %v1530_v43   ;;  %v1445_v46 = vpack.c.bf16 %v617_v44, %v614_v38  ;;  %v1525_v47 = vpack.c.bf16 %v745_v45, %v742_v39 }
 0x159   : > { %v1665_v48 = vpop.f32.mrf.mxu0  ;;  %v1697_v49 = vpop.f32.mrf.mxu1 }
 0x15a   : > { %1561 = vst [vmem:[%s2138_s15 + $0x50] sm:$0xff] %v1445_v46   ;;  %1577 = vst [vmem:[%s2138_s15 + $0xd0] sm:$0xff] %v1525_v47  }
 0x15b   : > { %v630_v50 = vpop.f32.mrf.mxu0  ;;  %v758_v51 = vpop.f32.mrf.mxu1 }
 0x15d   : > { %v1666_v52 = vpop.f32.mrf.mxu0  ;;  %v1698_v53 = vpop.f32.mrf.mxu1 }
 0x15e   : > { %v1460_v54 = vpack.c.bf16 %v1666_v52, %v1665_v48  ;;  %v1540_v55 = vpack.c.bf16 %v1698_v53, %v1697_v49 }
 0x15f   : > { %v633_v56 = vpop.f32.mrf.mxu0  ;;  %v761_v57 = vpop.f32.mrf.mxu1 }
 0x160   : > { %1564 = vst [vmem:[%s2138_s15 + $0x68] sm:$0xff] %v1460_v54   ;;  %1580 = vst [vmem:[%s2138_s15 + $0xe8] sm:$0xff] %v1540_v55   ;;  %v1455_v58 = vpack.c.bf16 %v633_v56, %v630_v50  ;;  %v1535_v59 = vpack.c.bf16 %v761_v57, %v758_v51 }
 0x161   : > { %v1669_v60 = vpop.f32.mrf.mxu0  ;;  %v1701_v61 = vpop.f32.mrf.mxu1 }
 0x162   : > { %1563 = vst [vmem:[%s2138_s15 + $0x60] sm:$0xff] %v1455_v58   ;;  %1579 = vst [vmem:[%s2138_s15 + $0xe0] sm:$0xff] %v1535_v59  }
 0x163   : > { %v646_v62 = vpop.f32.mrf.mxu0  ;;  %v774_v63 = vpop.f32.mrf.mxu1 }
 0x165   : > { %v1670_v0 = vpop.f32.mrf.mxu0  ;;  %v1702_v1 = vpop.f32.mrf.mxu1 }
 0x166   : > { %v1470_v2 = vpack.c.bf16 %v1670_v0, %v1669_v60  ;;  %v1550_v3 = vpack.c.bf16 %v1702_v1, %v1701_v61 }
 0x167   : > { %v649_v4 = vpop.f32.mrf.mxu0  ;;  %v777_v5 = vpop.f32.mrf.mxu1 }
 0x168   : > { %1566 = vst [vmem:[%s2138_s15 + $0x78] sm:$0xff] %v1470_v2   ;;  %1582 = vst [vmem:[%s2138_s15 + $0xf8] sm:$0xff] %v1550_v3   ;;  %v1465_v6 = vpack.c.bf16 %v649_v4, %v646_v62  ;;  %v1545_v7 = vpack.c.bf16 %v777_v5, %v774_v63 }
 0x16a   : > { %1565 = vst [vmem:[%s2138_s15 + $0x70] sm:$0xff] %v1465_v6   ;;  %1581 = vst [vmem:[%s2138_s15 + $0xf0] sm:$0xff] %v1545_v7  }
 0x16b   : > { %1887 = shalt.err (!%p1884_p0)
}
 0x16c   : > { %s1888_s4 = scalar_lea.hbm %s2173_s18, 4096  ;;  %s1892_s6 = scalar_lea.hbm %s2224_s2, 8192 }
 0x16d   : > { %p1889_p5 = scmp.ne.s32.totalorder %s2173_s18, %s1888_s4  ;;  %p1893_p4 = scmp.lt.s32.totalorder %s2173_s18, %s2224_s2 }
 0x16e   : > { %p1894_p6 = scmp.lt.s32.totalorder %s1892_s6, %s1888_s4 }
 0x16f   : > { %p1890_p2 = pnand %p1889_p5, %p2240_p11 }
 0x170   : > { %p1895_p8 = por %p1894_p6, %p1893_p4 }
 0x171   : > { %p1891_p1 = pneg %p1890_p2 }
 0x173   : > { %p1896_p3 = pnand %p1895_p8, %p1891_p1 }
 0x175   : > { %1899 = shalt.err (!%p1896_p3)
}
 0x176   : > { %s1949_s23 = smov 64   ;;  %s1950_s19 = smov 4  }
 0x177   : > { %1725 = dma.vmem_to_hbm [thread:$0]  (%p2240_p11), %s2175_s25, 4096, %s2173_s18, %s1110_s13, %s1949_s23, %s1949_s23, %s1950_s19  }
 0x178 PF: > { %s1138_s15 = sand.u32 1, %s1930_s9   ;;  %p2241_p7 = scmp.ne.s32.totalorder %s2230_s16, 0 }
 0x179   : > { %p2242_p9 = scmp.ge.s32.totalorder %s1942_s12, 2  ;;  %s1139_s17 = scalar_lea.sflag [#allocation4], %s1138_s15 }
 0x17b   : > { %p1736_p10 = pnand %p2242_p9, %p2241_p7 }
 0x17d   : > { %p1737_p12 = pneg %p1736_p10 }
 0x17f   : > { %1925 = dma.done.wait (%p1737_p12), %s1139_s17, 4096  }
 0x180   : > { %1927 = vsyncadd (%p1737_p12), %s1139_s17, 4294963200  ;;  %p16_p13 = scmp.ge.s32.totalorder %s2020_s21, 4   ;;  %s2243_s9 = smov %s1934_s10 }
 0x181   : > { %s2244_s10 = smov %s1938_s11  ;;  %s2245_s11 = smov %s2040_s29 }
 0x182   : > { %s2246_s12 = smov %s2020_s21  ;;  %18 = sbr.rel (!%p16_p13) target bundleno = 6 (0x6), region = 77 }
 0x187   :  { %1144 = vsyncpa [#allocation3], 1 }
 0x188   :  { %1146 = vsyncpa [#allocation3 + $0x1], 1 }
 0x189   :  { %1147 = vsyncpa [#allocation6], 1 }
 0x18a   :  { %1148 = vsyncpa [#allocation4], 1 }
 0x18b   :  { %1150 = vsyncpa [#allocation4 + $0x1], 1 }

</bundles_post_ra>
